<compile_context>
chip_gen: v6e
topology: v6e:2x2x1
jax: 0.10.0
libtpu: 0.0.40
codegen_flags: <defaults>
</compile_context>

<pallas_src>
import functools

import jax
import jax.numpy as jnp
from jax.experimental import pallas as pl
from jax.experimental.pallas import tpu as pltpu

_LANE = 128
_SUBLANE = 8
_TARGET_STEP_BYTES = 2 * 1024 * 1024   # ~2 MiB of raw input per grid step (amortize ~0.35us/step)
_MAX_TILE_L = 16 * 1024                # hard cap on lanes per stripe
_F32_TEMPS = 6                         # conservative count of live f32 intermediates per tile


def _round_up(x, m):
    return ((x + m - 1) // m) * m


def _cdiv(a, b):
    return (a + b - 1) // b


def _vmem_limit_bytes():
    """Scoped-VMEM limit: ~3/4 of physical VMEM, capped, safe fallback (v7x = 64 MiB/TC)."""
    cap = 64 * 1024 * 1024
    try:
        cap = int(getattr(pltpu.get_tpu_info(), "vmem_capacity_bytes", cap))
    except Exception:
        pass
    return int(min(cap * 3 // 4, 96 * 1024 * 1024))


def _pick_tile_l(L, rows_pad, itemsize, budget):
    """Largest useful lane-stripe width (multiple of 128, or the full L).

    Sized so 2 inputs x 2 pipeline buffers (+ f32 temporaries) fit `budget`
    and each grid step moves a few MiB of input; prefers a width that divides
    L so the masked-tail branch disappears.  Returns None if even 128 lanes
    do not fit (caller must also tile the row axis).
    """
    bytes_per_lane = rows_pad * (2 * 2 * itemsize + _F32_TEMPS * 4)
    cap_budget = budget // max(bytes_per_lane, 1)
    cap_target = max(_TARGET_STEP_BYTES // max(2 * rows_pad * itemsize, 1), _LANE)
    cap = min(cap_budget, max(cap_target, 4 * _LANE), _MAX_TILE_L)
    if cap < _LANE:
        return None
    if L <= cap:
        return int(L)                               # one stripe: no tail, no lane mask
    cap = (cap // _LANE) * _LANE
    for t in range(cap, _LANE - 1, -_LANE):         # prefer a divisor of L
        if L % t == 0:
            if 2 * t >= cap:
                return int(t)
            break
    return int(cap)


def _pick_tiles_2d(n_rows, L, itemsize, vmem_limit):
    """(tile_r, tile_l) for the flattened [N*C, L] mean/sum layout."""
    budget = (vmem_limit * 3) // 5                  # pipeline / compiler headroom
    rows_pad = _round_up(max(n_rows, 1), _SUBLANE)
    tl = _pick_tile_l(L, rows_pad, itemsize, budget)
    if tl is not None:
        return int(n_rows), tl
    # Row count too large even for a 128-lane stripe: tile rows too (multiple of 8).
    tl = int(L) if L < _LANE else _LANE
    bytes_per_row = _round_up(tl, _LANE) * (2 * 2 * itemsize + _F32_TEMPS * 4)
    tile_r = (budget // max(bytes_per_row, 1)) // _SUBLANE * _SUBLANE
    tile_r = max(_SUBLANE, min(tile_r, _round_up(n_rows, _SUBLANE)))
    if tile_r >= n_rows:
        tile_r = n_rows
    return int(tile_r), tl


def _cce_sum_kernel(x_ref, t_ref, m_ref, out_ref, *, tile_r, tile_l, total_l,
                    row_fold, lane_fold):
    """Per-(row-tile, lane-tile) partial sum of t*log(p) + (1-t)*log(1-p).

    The overall minus sign and the 1/(N*L) mean scale are folded into the
    wrapper's final (tiny) reduction, saving VPU negates per element.
    """
    p = x_ref[...].astype(jnp.float32)              # (tile_r, tile_l)
    t = t_ref[...].astype(jnp.float32)
    log_p = jnp.log(p)                              # EUP
    log_q = jnp.log(1.0 - p)                        # EUP
    elem = log_q + t * (log_p - log_q)              # == t*log(p) + (1-t)*log(1-p)

    valid = m_ref[...] > 0.5                        # (tile_r, 1): class-0 ignore + row padding
    if total_l % tile_l != 0:                       # masked tail only when tile_l doesn't divide L
        l_idx = jax.lax.broadcasted_iota(jnp.int32, elem.shape, 1)
        valid = jnp.logical_and(valid, pl.program_id(1) * tile_l + l_idx < total_l)
    elem = jnp.where(valid, elem, 0.0)              # where, not multiply: no inf*0 NaN leakage

    if row_fold:                                    # several row tiles -> tile_r % 8 == 0
        part = elem[0:_SUBLANE, :]
        for s in range(1, tile_r // _SUBLANE):
            part = part + elem[s * _SUBLANE:(s + 1) * _SUBLANE, :]
    else:
        part = jnp.sum(elem, axis=0, keepdims=True)  # (1, tile_l)
    if lane_fold:                                   # fold lanes to one vreg width: tiny writeback
        acc = part[:, 0:_LANE]
        for s in range(1, tile_l // _LANE):
            acc = acc + part[:, s * _LANE:(s + 1) * _LANE]
        part = acc
    out_ref[...] = part


def _cce_none_kernel(p_ref, t_ref, o_ref, *, start_class, total_l, tile_l):
    """Per-position loss over one [N, C, tile_l] stripe (reduction='none')."""
    p = p_ref[...].astype(jnp.float32)              # (N, C, tile_l)
    t = t_ref[...].astype(jnp.float32)
    log_p = jnp.log(p)
    log_q = jnp.log(1.0 - p)
    elem = log_q + t * (log_p - log_q)

    mask = None
    if start_class > 0:                             # ignore_index == 0: drop class 0 in-kernel
        c_idx = jax.lax.broadcasted_iota(jnp.int32, elem.shape, 1)
        mask = c_idx >= start_class
    if total_l % tile_l != 0:                       # keep NaNs out of the tail columns
        l_idx = jax.lax.broadcasted_iota(jnp.int32, elem.shape, 2)
        ok = pl.program_id(0) * tile_l + l_idx < total_l
        mask = ok if mask is None else jnp.logical_and(mask, ok)
    if mask is not None:
        elem = jnp.where(mask, elem, 0.0)
    # One negate per *output* element (not per input element).
    o_ref[...] = (-jnp.sum(elem, axis=1)).astype(o_ref.dtype)


def categorical_cross_entropy_loss(predicts, targets, *, ignore_index=0,
                                   reduction="mean", tile_l=None):
    """JAX/Pallas equivalent of CategoricalCrossEntropyLoss.forward.

    predicts, targets: [N, C, *] arrays (probabilities / one-hot-ish targets).
    Streaming bf16 inputs is supported (and recommended when the producer can
    emit them): the kernel upcasts to f32 internally, halving HBM traffic.
    `tile_l` is an optional tuning/testing override (multiple of 128 or == L).
    """
    assert predicts.shape == targets.shape, "predict & target shape do not match"
    if reduction not in ("mean", "sum", "none"):
        raise ValueError(f"unknown reduction: {reduction}")

    orig_spatial = predicts.shape[2:]
    if predicts.ndim != 3:
        n0, c0 = predicts.shape[:2]
        predicts = predicts.reshape(n0, c0, -1)
        targets = targets.reshape(n0, c0, -1)
    N, C, L = predicts.shape

    # The PyTorch module only special-cases ignore_index == 0 (drop class 0);
    # other values are silently ignored there, and we mirror that.
    start_class = 1 if ignore_index == 0 else 0

    itemsize = jnp.dtype(predicts.dtype).itemsize
    vmem_limit = _vmem_limit_bytes()

    if reduction == "none":
        tl = int(tile_l) if tile_l is not None else _pick_tile_l(
            L, N * _round_up(C, _SUBLANE), itemsize, (vmem_limit * 3) // 5)
        if tl is None:
            tl = _LANE if L >= _LANE else L   # TODO(synk): tile the batch axis for huge N*C
        num_l = _cdiv(L, tl)
        kernel = functools.partial(_cce_none_kernel, start_class=start_class,
                                   total_l=L, tile_l=tl)
        out = pl.pallas_call(
            kernel,
            grid=(num_l,),
            in_specs=[pl.BlockSpec((N, C, tl), lambda j: (0, 0, j)),
                      pl.BlockSpec((N, C, tl), lambda j: (0, 0, j))],
            out_specs=pl.BlockSpec((N, tl), lambda j: (0, j)),
            out_shape=jax.ShapeDtypeStruct((N, L), jnp.float32),
            compiler_params=pltpu.CompilerParams(
                dimension_semantics=("parallel",),
                vmem_limit_bytes=vmem_limit),
            cost_estimate=pl.CostEstimate(
                flops=6 * N * C * L, transcendentals=2 * N * C * L,
                bytes_accessed=2 * N * C * L * itemsize + N * L * 4),
        )(predicts, targets)
        return out.reshape((N,) + orig_spatial) if orig_spatial else out

    # ---------------- reduction in ("mean", "sum") ----------------
    # Flatten (N, C) into a dense sublane axis: no 8-sublane padding waste
    # when C < 8; the class-0 ignore becomes a tiny per-row mask input.
    NC = N * C
    x2 = predicts.reshape(NC, L)
    t2 = targets.reshape(NC, L)

    tile_r, tl = _pick_tiles_2d(NC, L, itemsize, vmem_limit)
    if tile_l is not None:
        tl = int(tile_l)
    num_r = _cdiv(NC, tile_r)
    num_l = _cdiv(L, tl)
    row_fold = num_r > 1                     # tile_r is a multiple of 8 in that case
    lane_fold = (tl % _LANE == 0) and (tl > _LANE)
    row_out = _SUBLANE if row_fold else 1
    lane_w = _LANE if lane_fold else tl

    # Per-row validity: drops the ignored class and any padded rows of a
    # partial last row tile.  Built once in XLA; tiny.
    r_total = num_r * tile_r
    r_idx = jnp.arange(r_total, dtype=jnp.int32)
    row_mask = ((r_idx < NC) & (r_idx % C >= start_class)).astype(jnp.float32)
    row_mask = row_mask.reshape(r_total, 1)

    kernel = functools.partial(_cce_sum_kernel, tile_r=tile_r, tile_l=tl,
                               total_l=L, row_fold=row_fold, lane_fold=lane_fold)

    partials = pl.pallas_call(
        kernel,
        grid=(num_r, num_l),
        in_specs=[pl.BlockSpec((tile_r, tl), lambda i, j: (i, j)),
                  pl.BlockSpec((tile_r, tl), lambda i, j: (i, j)),
                  pl.BlockSpec((tile_r, 1), lambda i, j: (i, 0))],
        out_specs=pl.BlockSpec((row_out, lane_w), lambda i, j: (i, j)),
        out_shape=jax.ShapeDtypeStruct((num_r * row_out, num_l * lane_w), jnp.float32),
        compiler_params=pltpu.CompilerParams(
            dimension_semantics=("parallel", "parallel"),   # no carried state -> v7x 2-TC shardable
            vmem_limit_bytes=vmem_limit),
        cost_estimate=pl.CostEstimate(
            flops=6 * NC * L, transcendentals=2 * NC * L,
            bytes_accessed=2 * NC * L * itemsize + num_r * row_out * num_l * lane_w * 4),
    )(x2, t2, row_mask)

    total = jnp.sum(partials)                # tiny XLA reduce over per-tile partials
    if reduction == "mean":
        return -total / jnp.float32(N * L)   # minus sign folded here (logs kept un-negated)
    return -total


# ----------------------------- test harness -----------------------------

def _reference(predicts, targets, ignore_index=0, reduction="mean"):
    # Pure-JAX mirror of the PyTorch forward (inputs flattened to [N, C, L]).
    N, C = predicts.shape[:2]
    predicts = predicts.reshape(N, C, -1).astype(jnp.float32)
    targets = targets.reshape(N, C, -1).astype(jnp.float32)
    if ignore_index == 0:
        predicts = predicts[:, 1:, :]
        targets = targets[:, 1:, :]
    term_true = -jnp.log(predicts)
    term_false = -jnp.log(1.0 - predicts)
    loss = jnp.sum(term_true * targets + term_false * (1.0 - targets), axis=1)
    if reduction == "mean":
        return jnp.mean(loss)
    if reduction == "sum":
        return jnp.sum(loss)
    return loss


def _make_inputs(key, shape):
    # shape = (N, C, *spatial)
    N, C = shape[:2]
    k_p, k_t = jax.random.split(key)
    logits = jax.random.normal(k_p, shape, dtype=jnp.float32)
    predicts = jax.nn.softmax(logits, axis=1) * 0.98 + 0.01        # strictly in (0, 1)
    labels = jax.random.randint(k_t, (N,) + shape[2:], 0, C)
    targets = jax.nn.one_hot(labels, C, axis=1, dtype=jnp.float32)  # (N, C, *spatial)
    return predicts, targets


if __name__ == "__main__":
    key = jax.random.PRNGKey(0)

    # [N, C, H, W] = [2, 4, 16, 16]
    predicts, targets = _make_inputs(key, (2, 4, 16, 16))

    out_mean = jax.block_until_ready(
        categorical_cross_entropy_loss(predicts, targets, ignore_index=0, reduction="mean"))
    ref_mean = _reference(predicts, targets, 0, "mean")
    assert jnp.allclose(out_mean, ref_mean, rtol=1e-5, atol=1e-5), (out_mean, ref_mean)

    out_none = jax.block_until_ready(
        categorical_cross_entropy_loss(predicts, targets, ignore_index=0, reduction="none"))
    ref_none = _reference(predicts, targets, 0, "none")            # (N, L)
    assert out_none.shape == (2, 16, 16)
    assert jnp.allclose(out_none.reshape(2, -1), ref_none, rtol=1e-5, atol=1e-5)

    # non-zero ignore_index -> all classes counted (mirrors the torch module)
    out_all = jax.block_until_ready(
        categorical_cross_entropy_loss(predicts, targets, ignore_index=-100, reduction="mean"))
    ref_all = _reference(predicts, targets, -100, "mean")
    assert jnp.allclose(out_all, ref_all, rtol=1e-5, atol=1e-5), (out_all, ref_all)

    # multi-tile grid + masked lane tail (640 = 2*256 + 128 with tile_l=256)
    p2, t2 = _make_inputs(jax.random.PRNGKey(1), (2, 4, 640))
    out_sum = jax.block_until_ready(
        categorical_cross_entropy_loss(p2, t2, ignore_index=0, reduction="sum", tile_l=256))
    ref_sum = _reference(p2, t2, 0, "sum")
    assert jnp.allclose(out_sum, ref_sum, rtol=1e-5, atol=1e-4), (out_sum, ref_sum)

    out_none2 = jax.block_until_ready(
        categorical_cross_entropy_loss(p2, t2, ignore_index=0, reduction="none", tile_l=256))
    ref_none2 = _reference(p2, t2, 0, "none")
    assert out_none2.shape == (2, 640)
    assert jnp.allclose(out_none2, ref_none2, rtol=1e-5, atol=1e-5)

    # bf16 streaming path: inputs stay bf16 in HBM, kernel upcasts to f32
    p_bf = predicts.astype(jnp.bfloat16)
    t_bf = targets.astype(jnp.bfloat16)
    out_bf = jax.block_until_ready(
        categorical_cross_entropy_loss(p_bf, t_bf, ignore_index=0, reduction="mean"))
    ref_bf = _reference(p_bf.astype(jnp.float32), t_bf.astype(jnp.float32), 0, "mean")
    assert jnp.allclose(out_bf, ref_bf, rtol=1e-4, atol=1e-4), (out_bf, ref_bf)

    print("KERNEL_OK")
</pallas_src>

<mosaic_0001>
module attributes {stable_mosaic.version = 11 : i64} {
  func.func @_cce_sum_kernel(%arg0: i32, %arg1: i32, %arg2: memref<8x256xf32, #tpu.memory_space<vmem>>, %arg3: memref<8x256xf32, #tpu.memory_space<vmem>>, %arg4: memref<8x1xf32, #tpu.memory_space<vmem>>, %arg5: memref<1x128xf32, #tpu.memory_space<vmem>>) attributes {dimension_semantics = [#tpu.dimension_semantics<parallel>, #tpu.dimension_semantics<parallel>], iteration_bounds = array<i64: 1, 1>, scalar_prefetch = 0 : i64, scratch_operands = 0 : i64, tpu.core_type = #tpu.core_type<tc>, window_params = [{transform_indices = @transform_0, window_bounds = array<i64: 8, 256>}, {transform_indices = @transform_1, window_bounds = array<i64: 8, 256>}, {transform_indices = @transform_2, window_bounds = array<i64: 8, 1>}, {transform_indices = @transform_3, window_bounds = array<i64: 1, 128>}]} {
    %c0 = arith.constant 0 : index
    %c0_0 = arith.constant 0 : index
    %0 = vector.load %arg2[%c0, %c0_0] : memref<8x256xf32, #tpu.memory_space<vmem>>, vector<8x256xf32>
    %c0_1 = arith.constant 0 : index
    %c0_2 = arith.constant 0 : index
    %1 = vector.load %arg3[%c0_1, %c0_2] : memref<8x256xf32, #tpu.memory_space<vmem>>, vector<8x256xf32>
    %2 = math.log %0 : vector<8x256xf32>
    %cst = arith.constant 1.000000e+00 : f32
    %3 = vector.broadcast %cst : f32 to vector<8x256xf32>
    %4 = arith.subf %3, %0 : vector<8x256xf32>
    %5 = math.log %4 : vector<8x256xf32>
    %6 = arith.subf %2, %5 : vector<8x256xf32>
    %7 = arith.mulf %1, %6 : vector<8x256xf32>
    %8 = arith.addf %5, %7 : vector<8x256xf32>
    %c0_3 = arith.constant 0 : index
    %c0_4 = arith.constant 0 : index
    %9 = vector.load %arg4[%c0_3, %c0_4] : memref<8x1xf32, #tpu.memory_space<vmem>>, vector<8x1xf32>
    %cst_5 = arith.constant 5.000000e-01 : f32
    %10 = vector.broadcast %cst_5 : f32 to vector<8x1xf32>
    %11 = arith.cmpf ogt, %9, %10 : vector<8x1xf32>
    %cst_6 = arith.constant 0.000000e+00 : f32
    %12 = vector.shape_cast %11 : vector<8x1xi1> to vector<8x1xi1>
    %13 = vector.broadcast %12 : vector<8x1xi1> to vector<8x256xi1>
    %14 = vector.broadcast %cst_6 : f32 to vector<8x256xf32>
    %15 = arith.select %13, %8, %14 : vector<8x256xi1>, vector<8x256xf32>
    %cst_7 = arith.constant dense<0.000000e+00> : vector<256xf32>
    %16 = vector.multi_reduction <add>, %15, %cst_7 [0] : vector<8x256xf32> to vector<256xf32>
    %17 = vector.shape_cast %16 : vector<256xf32> to vector<1x256xf32>
    %18 = vector.extract_strided_slice %17 {offsets = [0, 0], sizes = [1, 128], strides = [1, 1]} : vector<1x256xf32> to vector<1x128xf32>
    %19 = vector.extract_strided_slice %17 {offsets = [0, 128], sizes = [1, 128], strides = [1, 1]} : vector<1x256xf32> to vector<1x128xf32>
    %20 = arith.addf %18, %19 : vector<1x128xf32>
    %c0_8 = arith.constant 0 : index
    %c0_9 = arith.constant 0 : index
    %21 = vector.load %arg5[%c0_8, %c0_9] : memref<1x128xf32, #tpu.memory_space<vmem>>, vector<1x128xf32>
    tpu.vector_store %arg5[%c0_8, %c0_9], %20 {strides = array<i32>} : memref<1x128xf32, #tpu.memory_space<vmem>>, vector<1x128xf32>,
    return
  }
  func.func @transform_0(%arg0: i32, %arg1: i32) -> (i32, i32) {
    %c0_i32 = arith.constant 0 : i32
    return %arg0, %arg1 : i32, i32
  }
  func.func @transform_1(%arg0: i32, %arg1: i32) -> (i32, i32) {
    %c0_i32 = arith.constant 0 : i32
    return %arg0, %arg1 : i32, i32
  }
  func.func @transform_2(%arg0: i32, %arg1: i32) -> (i32, i32) {
    %c0_i32 = arith.constant 0 : i32
    %c0_i32_0 = arith.constant 0 : i32
    return %arg0, %c0_i32 : i32, i32
  }
  func.func @transform_3(%arg0: i32, %arg1: i32) -> (i32, i32) {
    %c0_i32 = arith.constant 0 : i32
    return %arg0, %arg1 : i32, i32
  }
}

</mosaic_0001>

<bundles_post_ra>
// kernel: tpu_custom_call.1
= control target key start
LH: loop header
LB: loop body
LE: loop exit
PB: predicated region body
PF: predicated region fallthrough
CT: control target
= control target key end

     0   :  { %8 = vsyncpa [#allocation3], 0  ;;  %s213_s0 = inlined_call_operand.hbm [shape: f32[8,256], index: 0, kind: input, shape index: {}]   ;;  %s214_s1 = inlined_call_operand.hbm [shape: f32[8,256], index: 1, kind: input, shape index: {}]   ;;  %s215_s2 = inlined_call_operand.vmem [shape: f32[8,1], index: 2, kind: input, shape index: {}]   ;;  %s216_s3 = inlined_call_operand.hbm [shape: f32[1,128], index: 3, kind: output, shape index: {}]  }
   0x1   :  { %9 = vsyncpa [#allocation6], 0 }
   0x2   :  { %10 = vsyncpa [#allocation4], 0  ;;  %s177_s12 = smov [#allocation2]   ;;  %s178_s14 = smov [#allocation5]  }
   0x3   :  { %s17_s13 = sshll.u32 %s177_s12, 4  ;;  %s27_s15 = sshll.u32 %s178_s14, 4  ;;  %s18_s13 = int_to_ptr.vmem [resolvable:$true] %s17_s13  ;;  %s28_s15 = int_to_ptr.vmem [resolvable:$true] %s27_s15 }
   0x4   :  { %s119_s16 = scalar_lea.vmem %s18_s13, 256  ;;  %p124_p1 = scmp.lt.s32.totalorder %s18_s13, %s18_s13 }
   0x5   :  { %p120_p0 = scmp.ne.s32.totalorder %s18_s13, %s119_s16  ;;  %p125_p2 = scmp.lt.s32.totalorder %s119_s16, %s119_s16 }
   0x7   :  { %p126_p3 = por %p125_p2, %p124_p1 }
   0x9   :  { %p127_p4 = pnand %p126_p3, %p120_p0 }
   0xb   :  { %130 = shalt.err (!%p127_p4)
}
   0xc   :  { %20 = dma.hbm_to_vmem [thread:$0]  %s213_s0, 256, %s18_s13, [#allocation3]  }
   0xd   :  { %s139_s19 = scalar_lea.vmem %s28_s15, 256  ;;  %p144_p6 = scmp.lt.s32.totalorder %s28_s15, %s28_s15 }
   0xe   :  { %p140_p5 = scmp.ne.s32.totalorder %s28_s15, %s139_s19  ;;  %p145_p7 = scmp.lt.s32.totalorder %s139_s19, %s139_s19 }
  0x10   :  { %p146_p8 = por %p145_p7, %p144_p6 }
  0x12   :  { %p147_p9 = pnand %p146_p8, %p140_p5 }
  0x14   :  { %150 = shalt.err (!%p147_p9)
}
  0x15   :  { %30 = dma.hbm_to_vmem [thread:$0]  %s214_s1, 256, %s28_s15, [#allocation6]  }
  0x16   :  { %171 = dma.done.wait [#allocation3], 256  }
  0x17   :  { %172 = vsyncadd [#allocation3], 4294967040 }
  0x18   :  { %173 = dma.done.wait [#allocation6], 256  }
  0x19   :  { %174 = vsyncadd [#allocation6], 4294967040  ;;  %v179_v0 = vmov 0   ;;  %v59_v1 = vld [vmem:[%s215_s2] sm:$0xff]  ;;  %v40_v4 = vld [vmem:[#allocation2 + $0x8] sm:$0xff]  ;;  %s180_s0 = smov [#allocation7]  }
  0x1a   :  { %102 = vset.pattern.permute.xlu0 %v179_v0  ;;  %vm60_vm0 = vcmp.gt.f32.partialorder %v59_v1, 0.5  ;;  %v39_v3 = vld [vmem:[#allocation2] sm:$0xff]  ;;  %v48_v6 = vsub.f32 1.0, %v40_v4  ;;  %v41_v17 = vld [vmem:[#allocation5] sm:$0xff]  ;;  %v42_v18 = vld [vmem:[#allocation5 + $0x8] sm:$0xff]  ;;  %s88_s1 = sshll.u32 %s180_s0, 4  ;;  %s89_s1 = int_to_ptr.vmem [resolvable:$true] %s88_s1 }
  0x1b   :  { %v61_v2 = vsel %vm60_vm0, 1, %v179_v0  ;;  %v47_v5 = vsub.f32 1.0, %v39_v3  ;;  %103 = vlog2.f32 %v39_v3  ;;  %s151_s2 = scalar_lea.vmem %s89_s1, 16  ;;  %s155_s24 = scalar_lea.vmem %s89_s1, 32 }
  0x1c   :  { %63 = vperm.xlu0 %102, %v61_v2   ;;  %105 = vlog2.f32 %v40_v4  ;;  %p152_p10 = scmp.ne.s32.totalorder %s89_s1, %s151_s2  ;;  %p156_p11 = scmp.lt.s32.totalorder %s89_s1, %s89_s1 }
  0x1d   :  { %107 = vlog2.f32 %v47_v5  ;;  %p157_p12 = scmp.lt.s32.totalorder %s155_s24, %s151_s2 }
  0x1e   :  { %109 = vlog2.f32 %v48_v6 }
  0x1f   :  { %p158_p13 = por %p157_p12, %p156_p11 }
  0x21   :  { %p159_p0 = pnand %p158_p13, %p152_p10 }
  0x28   :  { %v104_v7 = vpop.eup %103 }
  0x29   :  { %v106_v8 = vpop.eup %105  ;;  %v44_v11 = vmul.f32 0.6931472, %v104_v7 }
  0x2a   :  { %v108_v9 = vpop.eup %107  ;;  %v46_v12 = vmul.f32 0.6931472, %v106_v8 }
  0x2b   :  { %v110_v10 = vpop.eup %109  ;;  %v50_v13 = vmul.f32 0.6931472, %v108_v9 }
  0x2c   :  { %v52_v14 = vmul.f32 0.6931472, %v110_v10 }
  0x2d   :  { %v53_v15 = vsub.f32 %v44_v11, %v50_v13 }
  0x2e   :  { %v54_v16 = vsub.f32 %v46_v12, %v52_v14 }
  0x2f   :  { %v55_v19 = vmul.f32 %v53_v15, %v41_v17 }
  0x30   :  { %v56_v20 = vmul.f32 %v54_v16, %v42_v18 }
  0x31   :  { %v57_v21 = vadd.f32 %v55_v19, %v50_v13 }
  0x32   :  { %v58_v22 = vadd.f32 %v56_v20, %v52_v14 }
  0x97   :  { %v64_v23 = vpop.permute.xlu0 %63 }
  0x98   :  { %vm65_vm1 = vcmp.eq.s32.totalorder %v64_v23, 1 }
  0x99   :  { %v66_v24 = vsel %vm65_vm1, %v57_v21, 0.0  ;;  %v67_v25 = vsel %vm65_vm1, %v58_v22, 0.0 }
  0x9a   :  { %v68_v26 = vrot.slane %v66_v24, 4  ;;  %v74_v27 = vrot.slane %v67_v25, 4 }
  0x9c   :  { %v69_v28 = vadd.f32 %v68_v26, %v66_v24  ;;  %v75_v29 = vadd.f32 %v74_v27, %v67_v25 }
  0x9e   :  { %v70_v30 = vrot.slane %v69_v28, 2  ;;  %v76_v31 = vrot.slane %v75_v29, 2 }
  0xa0   :  { %v71_v32 = vadd.f32 %v70_v30, %v69_v28  ;;  %v77_v33 = vadd.f32 %v76_v31, %v75_v29 }
  0xa2   :  { %v72_v34 = vrot.slane %v71_v32, 1  ;;  %v78_v35 = vrot.slane %v77_v33, 1 }
  0xa4   :  { %v73_v36 = vadd.f32 %v72_v34, %v71_v32  ;;  %v79_v37 = vadd.f32 %v78_v35, %v77_v33 }
  0xa6   :  { %v80_v38 = vadd.f32 %v79_v37, %v73_v36 }
  0xa8   :  { %81 = vst [vmem:[#allocation7] sm:$0x1] %v80_v38 }
  0xa9   :  { %162 = shalt.err (!%p159_p0)
}
  0xaa   :  { %91 = dma.vmem_to_hbm [thread:$0]  %s89_s1, 16, %s216_s3, [#allocation4]  }
  0xab   :  { %175 = dma.done.wait [#allocation4], 16  }
  0xac   :  { %176 = vsyncadd [#allocation4], 4294967280 }
  0xad   :  { %95 = vsyncpa [#allocation3], 1 }
  0xae   :  { %96 = vsyncpa [#allocation6], 1 }
  0xaf   :  { %97 = vsyncpa [#allocation4], 1 }

</bundles_post_ra>
